<compile_context>
chip_gen: v5e
topology: v5e:2x2
jax: 0.10.0
libtpu: 0.0.40
codegen_flags: <defaults>
</compile_context>

<pallas_src>
import math

import jax
import jax.numpy as jnp
from jax.experimental import pallas as pl
from jax.experimental.pallas import tpu as pltpu


def _head_kernel(x_ref, w_ref, b_ref, o_ref):
    # x_ref: (TB, H) VMEM (f32/bf16)   w_ref: (8, H) VMEM, row 0 = weight
    # b_ref: (1, 1) SMEM scalar        o_ref: (1, 1, TB) VMEM (lane-dense)
    x = x_ref[...].astype(jnp.float32)
    w = w_ref[0:1, :].astype(jnp.float32)        # (1, H) -> sublane broadcast
    # N=1 output column: VPU multiply + XLU lane reduce; skip the MXU entirely.
    # (If a bundle dump ever shows the (TB, H) product spilling to VMEM, fall
    #  back to a fori_loop over ~512-lane chunks of H accumulating f32 partials.)
    s = jnp.sum(x * w, axis=-1)                  # (TB,), f32 accumulate
    o_ref[...] = (
        jax.nn.sigmoid(s + b_ref[0, 0])[None, None, :].astype(o_ref.dtype)
    )


def _round_up(x, m):
    return ((x + m - 1) // m) * m


def afq_head(pooler_output, weight, bias, *, block_b=2048):
    """sigmoid(pooler_output @ weight + bias).reshape(-1)

    pooler_output: (B, H) f32 or bf16
    weight:        (H, 1) f32   (stored as (in, out), i.e. torch weight.T)
    bias:          scalar-like
    """
    B, H = pooler_output.shape
    itemsize = jnp.dtype(pooler_output.dtype).itemsize

    # Batch-tile size: biggest tile whose 2x double-buffered activation stays
    # under ~20 MiB, so total VMEM (buffers + weight + output + scratch) fits
    # v7x's 64 MiB per-TC physical VMEM with headroom (v5e/v6e: 128 MiB).
    x_budget = 20 * 1024 * 1024
    tb_cap = max(8, (x_budget // (2 * H * itemsize)) // 8 * 8)
    tb = min(_round_up(block_b, 8), tb_cap, _round_up(B, 8))
    num_tiles = pl.cdiv(B, tb)
    # v7x megacore: ensure both TensorCores get a grid step when B allows it.
    if num_tiles == 1 and B > 8:
        tb = max(8, _round_up(pl.cdiv(B, 2), 8))
        num_tiles = pl.cdiv(B, tb)

    # No padding of the (B, H) activations: the cdiv grid's final partial block
    # has undefined OOB reads / dropped OOB writes; out[:B] below handles it.
    w_slab = jnp.broadcast_to(
        jnp.asarray(weight, jnp.float32).reshape(1, H), (8, H)
    )                                                     # aligned vreg loads
    b2d = jnp.asarray(bias, jnp.float32).reshape(1, 1)    # SMEM scalar

    cost = pl.CostEstimate(
        flops=2 * B * H,
        transcendentals=B,
        bytes_accessed=B * H * itemsize + 8 * H * 4 + num_tiles * tb * 4 + 4,
    )

    out = pl.pallas_call(
        _head_kernel,
        out_shape=jax.ShapeDtypeStruct((num_tiles, 1, tb), jnp.float32),
        grid=(num_tiles,),
        in_specs=[
            pl.BlockSpec((tb, H), lambda i: (i, 0)),            # pipelined x tiles
            pl.BlockSpec((8, H), lambda i: (0, 0)),             # resident weight slab
            pl.BlockSpec(memory_space=pltpu.MemorySpace.SMEM),  # bias scalar
        ],
        out_specs=pl.BlockSpec((1, 1, tb), lambda i: (i, 0, 0)),  # lane-dense row/step
        compiler_params=pltpu.CompilerParams(
            dimension_semantics=("parallel",),     # shard batch across v7x TCs
            vmem_limit_bytes=48 * 1024 * 1024,     # > v5e 16 MiB default, < v7x 64 MiB
        ),
        cost_estimate=cost,
    )(pooler_output, w_slab, b2d)

    # Tail rows of the last (partial) tile are unspecified — MUST slice to B.
    return out.reshape(-1)[:B]  # == .view(-1) in the torch module


def _xavier_uniform(key, fan_in, fan_out):
    # matches nn.init.xavier_uniform_ for a (fan_out, fan_in) torch weight
    limit = math.sqrt(6.0 / (fan_in + fan_out))
    # produce (fan_in, fan_out) so the kernel can do x @ W directly
    return jax.random.uniform(
        key, (fan_in, fan_out), jnp.float32, minval=-limit, maxval=limit
    )


if __name__ == "__main__":
    key = jax.random.PRNGKey(0)
    k_x, k_w = jax.random.split(key)

    batch, hidden = 8, 32  # small synthetic stand-in for BERT hidden_size

    # Synthetic stand-in for base_model(**X).pooler_output
    pooler_output = jax.random.normal(k_x, (batch, hidden), jnp.float32)

    # Deterministic head params (xavier_uniform_ weight, bias filled with 0.01)
    weight = _xavier_uniform(k_w, hidden, 1)     # (H, 1)
    bias = jnp.float32(0.01)

    # --- single-tile path ----------------------------------------------------
    logits = afq_head(pooler_output, weight, bias)
    jax.block_until_ready(logits)
    ref = jax.nn.sigmoid(pooler_output @ weight + bias).reshape(-1)
    assert logits.shape == (batch,)
    assert jnp.allclose(logits, ref, atol=1e-6, rtol=1e-6)

    # --- tiled + ragged-batch path (cdiv grid, no pad, partial last block) ---
    batch2 = 20
    x2 = jax.random.normal(jax.random.PRNGKey(1), (batch2, hidden), jnp.float32)
    logits2 = afq_head(x2, weight, bias, block_b=8)   # grid = cdiv(20, 8) = 3
    jax.block_until_ready(logits2)
    ref2 = jax.nn.sigmoid(x2 @ weight + bias).reshape(-1)
    assert logits2.shape == (batch2,)
    assert jnp.allclose(logits2, ref2, atol=1e-6, rtol=1e-6)

    # --- default tiling + megacore split path (tb auto-halved to 2 steps) ----
    batch3, hidden3 = 300, 64
    k3x, k3w = jax.random.split(jax.random.PRNGKey(2))
    x3 = jax.random.normal(k3x, (batch3, hidden3), jnp.float32)
    w3 = _xavier_uniform(k3w, hidden3, 1)
    logits3 = afq_head(x3, w3, bias)                  # 2 tiles of 152, tail OOB
    jax.block_until_ready(logits3)
    ref3 = jax.nn.sigmoid(x3 @ w3 + bias).reshape(-1)
    assert logits3.shape == (batch3,)
    assert jnp.allclose(logits3, ref3, atol=1e-5, rtol=1e-5)

    # --- bf16-input path (bandwidth-halving option), f32 accumulate ----------
    x_bf16 = pooler_output.astype(jnp.bfloat16)
    logits_bf = afq_head(x_bf16, weight, bias)
    jax.block_until_ready(logits_bf)
    ref_bf = jax.nn.sigmoid(x_bf16.astype(jnp.float32) @ weight + bias).reshape(-1)
    assert logits_bf.shape == (batch,)
    assert jnp.allclose(logits_bf, ref_bf, atol=1e-5, rtol=1e-5)

    print("KERNEL_OK")
</pallas_src>

<mosaic_0001>
module attributes {stable_mosaic.version = 11 : i64} {
  func.func @_head_kernel(%arg0: i32, %arg1: memref<8x32xf32, #tpu.memory_space<vmem>>, %arg2: memref<8x32xf32, #tpu.memory_space<vmem>>, %arg3: memref<1x1xf32, #tpu.memory_space<smem>>, %arg4: memref<1x1x8xf32, #tpu.memory_space<vmem>>) attributes {dimension_semantics = [#tpu.dimension_semantics<parallel>], iteration_bounds = array<i64: 1>, scalar_prefetch = 0 : i64, scratch_operands = 0 : i64, tpu.core_type = #tpu.core_type<tc>, window_params = [{transform_indices = @transform_0, window_bounds = array<i64: 8, 32>}, {pipeline_mode = #tpu.pipeline_mode<synchronous>, transform_indices = @transform_1, window_bounds = array<i64: 8, 32>}, {transform_indices = @transform_2, window_bounds = array<i64: 1, 1>}, {transform_indices = @transform_3, window_bounds = array<i64: 1, 1, 8>}]} {
    %c0 = arith.constant 0 : index
    %c0_0 = arith.constant 0 : index
    %0 = vector.load %arg1[%c0, %c0_0] : memref<8x32xf32, #tpu.memory_space<vmem>>, vector<8x32xf32>
    %c0_1 = arith.constant 0 : index
    %c0_2 = arith.constant 0 : index
    %1 = vector.load %arg2[%c0_1, %c0_2] : memref<8x32xf32, #tpu.memory_space<vmem>>, vector<1x32xf32>
    %2 = vector.broadcast %1 : vector<1x32xf32> to vector<8x32xf32>
    %3 = arith.mulf %0, %2 : vector<8x32xf32>
    %cst = arith.constant dense<0.000000e+00> : vector<8xf32>
    %4 = vector.multi_reduction <add>, %3, %cst [1] : vector<8x32xf32> to vector<8xf32>
    %c0_3 = arith.constant 0 : index
    %c0_4 = arith.constant 0 : index
    %5 = memref.load %arg3[%c0_3, %c0_4] : memref<1x1xf32, #tpu.memory_space<smem>>
    %6 = vector.broadcast %5 : f32 to vector<8xf32>
    %7 = arith.addf %4, %6 : vector<8xf32>
    %8 = arith.negf %7 : vector<8xf32>
    %9 = math.exp %8 : vector<8xf32>
    %cst_5 = arith.constant 1.000000e+00 : f32
    %10 = vector.broadcast %cst_5 : f32 to vector<8xf32>
    %11 = arith.addf %10, %9 : vector<8xf32>
    %12 = arith.divf %10, %11 : vector<8xf32>
    %13 = vector.shape_cast %12 : vector<8xf32> to vector<1x1x8xf32>
    %c0_6 = arith.constant 0 : index
    %c0_7 = arith.constant 0 : index
    %c0_8 = arith.constant 0 : index
    %14 = vector.load %arg4[%c0_6, %c0_7, %c0_8] : memref<1x1x8xf32, #tpu.memory_space<vmem>>, vector<1x1x8xf32>
    tpu.vector_store %arg4[%c0_6, %c0_7, %c0_8], %13 {strides = array<i32>} : memref<1x1x8xf32, #tpu.memory_space<vmem>>, vector<1x1x8xf32>,
    return
  }
  func.func @transform_0(%arg0: i32) -> (i32, i32) {
    %c0_i32 = arith.constant 0 : i32
    %c0_i32_0 = arith.constant 0 : i32
    return %arg0, %c0_i32 : i32, i32
  }
  func.func @transform_1(%arg0: i32) -> (i32, i32) {
    %c0_i32 = arith.constant 0 : i32
    %c0_i32_0 = arith.constant 0 : i32
    %c0_i32_1 = arith.constant 0 : i32
    return %c0_i32, %c0_i32_0 : i32, i32
  }
  func.func @transform_2(%arg0: i32) -> (i32, i32) {
    %c0_i32 = arith.constant 0 : i32
    %c0_i32_0 = arith.constant 0 : i32
    %c0_i32_1 = arith.constant 0 : i32
    return %c0_i32, %c0_i32_0 : i32, i32
  }
  func.func @transform_3(%arg0: i32) -> (i32, i32, i32) {
    %c0_i32 = arith.constant 0 : i32
    %c0_i32_0 = arith.constant 0 : i32
    %c0_i32_1 = arith.constant 0 : i32
    return %arg0, %c0_i32, %c0_i32_0 : i32, i32, i32
  }
}

</mosaic_0001>

<bundles_post_ra>
// kernel: tpu_custom_call.1
= control target key start
LH: loop header
LB: loop body
LE: loop exit
PB: predicated region body
PF: predicated region fallthrough
CT: control target
= control target key end

     0   :  { %9 = vsyncpa [#allocation4], 0  ;;  %s221_s0 = inlined_call_operand.hbm [shape: f32[8,32], index: 0, kind: input, shape index: {}]   ;;  %s222_s1 = inlined_call_operand.hbm [shape: f32[8,32], index: 1, kind: input, shape index: {}]   ;;  %s223_s2 = inlined_call_operand.<no memory space> [shape: f32[1,1], index: 2, kind: input, shape index: {}]   ;;  %s224_s3 = inlined_call_operand.hbm [shape: f32[1,1,8], index: 3, kind: output, shape index: {}]  }
   0x1   :  { %10 = vsyncpa [#allocation7], 0 }
   0x2   :  { %11 = vsyncpa [#allocation5], 0  ;;  %s17_s14 = sshll.u32 %s221_s0, 4  ;;  %s186_s15 = smov [#allocation3]   ;;  %s18_s14 = int_to_ptr.hbm [resolvable:$true] %s17_s14 }
   0x3   :  { %s19_s16 = sshll.u32 %s186_s15, 4  ;;  %s28_s19 = sshll.u32 %s222_s1, 4  ;;  %s20_s16 = int_to_ptr.vmem [resolvable:$true] %s19_s16  ;;  %s29_s19 = int_to_ptr.hbm [resolvable:$true] %s28_s19 }
   0x4   :  { %22 = dma.hbm_to_vmem [thread:$0]  %s18_s14, 128, %s20_s16, [#allocation4]  }
   0x5   :  { %s187_s20 = smov [#allocation6]  }
   0x6   :  { %s30_s21 = sshll.u32 %s187_s20, 4  ;;  %s31_s21 = int_to_ptr.vmem [resolvable:$true] %s30_s21 }
   0x7   :  { %33 = dma.hbm_to_vmem [thread:$0]  %s29_s19, 128, %s31_s21, [#allocation7]  }
   0x8   :  { %180 = dma.done.wait [#allocation4], 128  }
   0x9   :  { %181 = vsyncadd [#allocation4], 4294967168 }
   0xa   :  { %182 = dma.done.wait [#allocation7], 128  }
   0xb   :  { %183 = vsyncadd [#allocation7], 4294967168  ;;  %v44_v0 = vld [vmem:[#allocation3] sm:$0xff]  ;;  %v103_v1 = vld [vmem:[#allocation6] ss:$0 sm:$0xff]  ;;  %vm48_vm0 = vcmask 261120   ;;  %v53_v4 = vstv %s223_s2  ;;  %v75_v13 = vlaneseq }
   0xc   :  { %v47_v2 = vmul.f32 %v103_v1, %v44_v0  ;;  %s188_s1 = smov [#allocation8]   ;;  %s88_s25 = sshll.u32 %s224_s3, 4  ;;  %vm79_vm5 = vcmask 57344   ;;  %s89_s25 = int_to_ptr.hbm [resolvable:$true] %s88_s25 }
   0xd   :  { %v76_v18 = vand.u32 127, %v75_v13  ;;  %s86_s2 = sshll.u32 %s188_s1, 4  ;;  %s87_s2 = int_to_ptr.vmem [resolvable:$true] %s86_s2 }
   0xe   :  { %v49_v3 = vsel %vm48_vm0, %v47_v2, 0.0 }
   0xf   :  { %50 = vadd.xlane.f32.xlu0 %v49_v3 }
  0x82   :  { %v51_v5 = vpop.xlane.xlu0 %50 }
  0x83   :  { %v54_v6 = vadd.f32 %v53_v4, %v51_v5 }
  0x85   :  { %v99_v7 = vmul.f32 -1.442695, %v54_v6 }
  0x87   :  { %104 = vpow2.f32 %v99_v7 }
  0x8d   :  { %v105_v8 = vpop.eup %104 }
  0x8e   :  { %v58_v9 = vadd.f32 1.0, %v105_v8 }
  0x90   :  { %106 = vrcp.f32 %v58_v9  ;;  %v70_v14 = vand.u32 2147483648, %v58_v9  ;;  %v68_v16 = vand.u32 2147483647, %v58_v9  ;;  %vm64_vm2 = vweird.f32 %v58_v9 }
  0x92   :  { %v71_v19 = vor.u32 1.1754944e-38, %v70_v14  ;;  %vm69_vm4 = vcmp.eq.f32.partialorder %v68_v16, 8.507059e+37 }
  0x96   :  { %v107_v10 = vpop.eup %106 }
  0x97   :  { %v60_v11 = vmul.f32 %v107_v10, %v58_v9  ;;  %vm65_vm1 = vweird.f32 %v107_v10 }
  0x98   :  { %vm66_vm3 = vmor %vm64_vm2, %vm65_vm1 }
  0x99   :  { %v61_v12 = vsub.f32 1.0, %v60_v11 }
  0x9b   :  { %v62_v15 = vmul.f32 %v107_v10, %v61_v12 }
  0x9d   :  { %v63_v17 = vadd.f32 %v107_v10, %v62_v15 }
  0x9f   :  { %v67_v20 = vsel %vm66_vm3, %v107_v10, %v63_v17 }
  0xa0   :  { %v72_v21 = vsel %vm69_vm4, %v71_v19, %v67_v20 }
  0xa1   :  { %v77_v22 = vperm.slane %v72_v21, %v76_v18 }
  0xa3   :  { %80 = vst.msk [vmem:[#allocation8] sm:$0x1] %vm79_vm5, %v77_v22 }
  0xa4   :  { %91 = dma.vmem_to_hbm [thread:$0]  %s87_s2, 16, %s89_s25, [#allocation5]  }
  0xa5   :  { %184 = dma.done.wait [#allocation5], 16  }
  0xa6   :  { %185 = vsyncadd [#allocation5], 4294967280 }
  0xa7   :  { %96 = vsyncpa [#allocation4], 1 }
  0xa8   :  { %97 = vsyncpa [#allocation7], 1 }
  0xa9   :  { %98 = vsyncpa [#allocation5], 1 }

</bundles_post_ra>
